<compile_context>
chip_gen: v7x
topology: tpu7x:2x2x1
jax: 0.10.0
libtpu: 0.0.40
codegen_flags: <defaults>
</compile_context>

<pallas_src>
import jax
import jax.numpy as jnp
from jax.experimental import pallas as pl
from jax.experimental.pallas import tpu as pltpu


def _round_up(x, m):
    return ((x + m - 1) // m) * m


def _vmem_limit_bytes():
    """Gen-aware scoped-VMEM limit: ~3/4 of physical, capped at 64 MiB."""
    try:
        cap = int(pltpu.get_tpu_info().vmem_capacity_bytes)
    except Exception:  # info not available -> conservative default
        cap = 64 * 1024 * 1024
    return min(64 * 1024 * 1024, (3 * cap) // 4)


def _pick_tile(dim_pad, cap, min_blocks=1):
    """Largest 128-multiple tile <= cap that (nearly) divides dim_pad.

    dim_pad must already be a multiple of 128.  Candidates are accepted only
    if the extra padding they induce is <= min(128, dim_pad//8) and they leave
    at least `min_blocks` blocks.  Falls back to 128 (always legal).
    """
    max_extra = min(128, max(dim_pad // 8, 0))
    best = 128
    t = 128
    hi = min(cap, dim_pad)
    while t <= hi:
        padded = _round_up(dim_pad, t)
        if (padded - dim_pad) <= max_extra and (padded // t) >= min_blocks:
            best = t
        t += 128
    return best


# ----------------------------------------------------------------------------
# Kernel: y = x @ w + b, accumulated directly in the resident f32 output block
# ----------------------------------------------------------------------------
def _linear_kernel(x_ref, w_ref, b_ref, o_ref):
    # x_ref: (tm, tk) bf16, w_ref: (tk, tn) bf16, b_ref: (1, tn) f32
    # o_ref: (tm, tn) f32 -- resident across the k axis (index_map ignores k).
    k = pl.program_id(2)

    @pl.when(k == 0)
    def _init():
        # Seed the output with the bias (broadcast once per (i, j) tile).
        o_ref[...] = jnp.broadcast_to(b_ref[...], o_ref.shape)

    o_ref[...] += jnp.dot(x_ref[...], w_ref[...],
                          preferred_element_type=jnp.float32)


# ----------------------------------------------------------------------------
# One-time parameter preparation (hoisted out of the per-call hot path)
# ----------------------------------------------------------------------------
def prepare_linear_params(w, b, *, param_dtype=jnp.bfloat16,
                          tk_cap=2048, tn_cap=1024):
    """Pad + cast the Linear weight/bias once and pick tiles.

    w: (K, N) = (l*d, out_nf)   (transpose of torch Linear.weight)
    b: (N,) or (1, N)
    """
    K, N = w.shape
    b = jnp.asarray(b).reshape(1, N)

    K128 = _round_up(K, 128)
    N128 = _round_up(N, 128)

    # Keep Kt >= 2 so the BlockSpec pipeline always has a next weight block to
    # prefetch; keep Nt >= 2 so both v7x TensorCores get parallel work.
    tk = _pick_tile(K128, tk_cap, min_blocks=2)
    tn = _pick_tile(N128, tn_cap, min_blocks=2)
    K_pad = _round_up(K128, tk)
    N_pad = _round_up(N128, tn)

    wb = jnp.zeros((K_pad, N_pad), param_dtype).at[:K, :N].set(
        w.astype(param_dtype))
    bb = jnp.zeros((1, N_pad), jnp.float32).at[:, :N].set(
        b.astype(jnp.float32))

    return {"w": wb, "b": bb, "tk": tk, "tn": tn, "K": K, "N": N}


# ----------------------------------------------------------------------------
# Per-call wrapper: pad/cast activations only, launch the kernel
# ----------------------------------------------------------------------------
def pallas_linear(x2d, params):
    """y = x2d @ w + b on the MXU (low-precision streams, f32 accumulation)."""
    wb, bb = params["w"], params["b"]
    tk, tn = params["tk"], params["tn"]
    K, N = params["K"], params["N"]
    K_pad, N_pad = wb.shape

    M = x2d.shape[0]
    assert x2d.shape[1] == K

    # M: multiple of 16 (bf16 sublane packing); big tiles amortize per-step
    # pipeline overhead (~0.35 us / step).
    M_pad = _round_up(M, 16)
    tm = M_pad if M_pad <= 256 else 256
    M_pad = _round_up(M_pad, tm)

    xb = jnp.zeros((M_pad, K_pad), wb.dtype).at[:M, :K].set(
        x2d.astype(wb.dtype))

    grid = (M_pad // tm, N_pad // tn, K_pad // tk)
    mt, nt, kt = grid
    itemsize = jnp.dtype(wb.dtype).itemsize

    out = pl.pallas_call(
        _linear_kernel,
        out_shape=jax.ShapeDtypeStruct((M_pad, N_pad), jnp.float32),
        grid_spec=pltpu.PrefetchScalarGridSpec(
            num_scalar_prefetch=0,
            grid=grid,
            in_specs=[
                pl.BlockSpec((tm, tk), lambda i, j, k: (i, k)),   # activations
                pl.BlockSpec((tk, tn), lambda i, j, k: (k, j)),   # weight stream
                pl.BlockSpec((1, tn), lambda i, j, k: (0, j)),    # bias
            ],
            out_specs=pl.BlockSpec((tm, tn), lambda i, j, k: (i, j)),
        ),
        compiler_params=pltpu.CompilerParams(
            dimension_semantics=("parallel", "parallel", "arbitrary"),
            vmem_limit_bytes=_vmem_limit_bytes(),
        ),
        cost_estimate=pl.CostEstimate(
            flops=2 * M_pad * N_pad * K_pad,
            transcendentals=0,
            bytes_accessed=(M_pad * K_pad * itemsize * nt      # activations
                            + K_pad * N_pad * itemsize * mt    # weight stream
                            + M_pad * N_pad * 4),              # f32 output
        ),
    )(xb, wb, bb)

    return out[:M, :N]


# ----------------------------------------------------------------------------
# PredictionHead.forward
# ----------------------------------------------------------------------------
def prediction_head_forward(x, n_vars, params):
    """Pallas equivalent of PredictionHead.forward.

    x: (b, c*l, d) with c == n_vars
    params: output of prepare_linear_params (pre-padded weight/bias + tiles)
    returns (b, out_nf, c)
    """
    bsz, cl, d = x.shape
    c = n_vars
    l = cl // c
    assert l * c == cl

    # rearrange 'b (c l) d -> (b c) (l d)'
    x2d = x.reshape(bsz, c, l, d).reshape(bsz * c, l * d)

    # linear (Pallas kernel)
    y = pallas_linear(x2d, params)

    # rearrange '(b c) p -> b p c'
    out_nf = y.shape[-1]
    return y.reshape(bsz, c, out_nf).transpose(0, 2, 1)


def reference_forward(x, n_vars, w, b, *, bf16_inputs=True):
    bsz, cl, d = x.shape
    c = n_vars
    l = cl // c
    x2d = x.reshape(bsz, c, l, d).reshape(bsz * c, l * d)
    if bf16_inputs:  # same quantization as the kernel, f32 math
        x2d = x2d.astype(jnp.bfloat16).astype(jnp.float32)
        w = w.astype(jnp.bfloat16).astype(jnp.float32)
    y = x2d @ w + b
    return y.reshape(bsz, c, -1).transpose(0, 2, 1)


if __name__ == "__main__":
    key = jax.random.PRNGKey(0)

    def run_case(b_sz, c, l, d, out_nf, key):
        in_nf = l * d
        kx, kw, kb = jax.random.split(key, 3)
        x = jax.random.normal(kx, (b_sz, c * l, d), dtype=jnp.float32)
        bound = 1.0 / (in_nf ** 0.5)
        # torch Linear.weight is (out_nf, in_nf); store its transpose.
        w = jax.random.uniform(kw, (in_nf, out_nf), jnp.float32, -bound, bound)
        bias = jax.random.uniform(kb, (1, out_nf), jnp.float32, -bound, bound)

        # Pad/cast the weights once (init-time, not per forward call).
        params = prepare_linear_params(w, bias)

        out = jax.block_until_ready(prediction_head_forward(x, c, params))
        assert out.shape == (b_sz, out_nf, c), out.shape

        # Tight check vs a reference using identically-quantized bf16 inputs.
        ref_q = reference_forward(x, c, w, bias, bf16_inputs=True)
        assert jnp.allclose(out, ref_q, atol=1e-3, rtol=1e-3), "mismatch (bf16 ref)"

        # Loose sanity check vs the full-precision f32 reference.
        ref_f = reference_forward(x, c, w, bias, bf16_inputs=False)
        assert jnp.allclose(out, ref_f, atol=2e-1, rtol=5e-2), "mismatch (f32 ref)"

    k0, k1, k2 = jax.random.split(key, 3)
    # Small shapes consistent with the module: b=2, n_vars=4, l=8, d=16, pred=32.
    run_case(2, 4, 8, 16, 32, k0)
    # Ragged case: M = b*c = 15 (not a tile multiple), N = 200 (not lane mult.).
    run_case(3, 5, 8, 16, 200, k1)
    # Multi-K-step case: K = l*d = 1536 (exercises the K-reduction grid axis).
    run_case(2, 8, 24, 64, 336, k2)

    print("KERNEL_OK")
</pallas_src>

<mosaic_0001>
module attributes {stable_mosaic.version = 11 : i64} {
  func.func @_linear_kernel(%arg0: i32, %arg1: i32, %arg2: i32, %arg3: memref<16x128xbf16, #tpu.memory_space<vmem>>, %arg4: memref<128x128xbf16, #tpu.memory_space<vmem>>, %arg5: memref<1x128xf32, #tpu.memory_space<vmem>>, %arg6: memref<16x128xf32, #tpu.memory_space<vmem>>) attributes {dimension_semantics = [#tpu.dimension_semantics<parallel>, #tpu.dimension_semantics<parallel>, #tpu.dimension_semantics<arbitrary>], iteration_bounds = array<i64: 1, 1, 1>, scalar_prefetch = 0 : i64, scratch_operands = 0 : i64, tpu.core_type = #tpu.core_type<tc>, window_params = [{transform_indices = @transform_0, window_bounds = array<i64: 16, 128>}, {transform_indices = @transform_1, window_bounds = array<i64: 128, 128>}, {transform_indices = @transform_2, window_bounds = array<i64: 1, 128>}, {transform_indices = @transform_3, window_bounds = array<i64: 16, 128>}]} {
    %c0_i32 = arith.constant 0 : i32
    %0 = arith.cmpi eq, %arg2, %c0_i32 : i32
    %1 = arith.extui %0 : i1 to i32
    %c0_i32_0 = arith.constant 0 : i32
    %2 = arith.cmpi ne, %1, %c0_i32_0 : i32
    scf.if %2 {
      %c0_8 = arith.constant 0 : index
      %c0_9 = arith.constant 0 : index
      %9 = vector.load %arg5[%c0_8, %c0_9] : memref<1x128xf32, #tpu.memory_space<vmem>>, vector<1x128xf32>
      %10 = vector.shape_cast %9 : vector<1x128xf32> to vector<1x128xf32>
      %11 = vector.broadcast %10 : vector<1x128xf32> to vector<16x128xf32>
      %c0_10 = arith.constant 0 : index
      %c0_11 = arith.constant 0 : index
      %12 = vector.load %arg6[%c0_10, %c0_11] : memref<16x128xf32, #tpu.memory_space<vmem>>, vector<16x128xf32>
      tpu.vector_store %arg6[%c0_10, %c0_11], %11 {strides = array<i32>} : memref<16x128xf32, #tpu.memory_space<vmem>>, vector<16x128xf32>,
    } else {
    }
    %c0 = arith.constant 0 : index
    %c0_1 = arith.constant 0 : index
    %3 = vector.load %arg6[%c0, %c0_1] : memref<16x128xf32, #tpu.memory_space<vmem>>, vector<16x128xf32>
    %c0_2 = arith.constant 0 : index
    %c0_3 = arith.constant 0 : index
    %4 = vector.load %arg3[%c0_2, %c0_3] : memref<16x128xbf16, #tpu.memory_space<vmem>>, vector<16x128xbf16>
    %c0_4 = arith.constant 0 : index
    %c0_5 = arith.constant 0 : index
    %5 = vector.load %arg4[%c0_4, %c0_5] : memref<128x128xbf16, #tpu.memory_space<vmem>>, vector<128x128xbf16>
    %cst = arith.constant dense<0.000000e+00> : vector<16x128xf32>
    %6 = tpu.matmul %4, %5, %cst {dimension_numbers = #tpu.dot_dimension_numbers<[1], [0], [0], [1], [0, 0, 1, 1], [], []>} : vector<16x128xbf16>, vector<128x128xbf16>, vector<16x128xf32> -> vector<16x128xf32>
    %7 = arith.addf %3, %6 : vector<16x128xf32>
    %c0_6 = arith.constant 0 : index
    %c0_7 = arith.constant 0 : index
    %8 = vector.load %arg6[%c0_6, %c0_7] : memref<16x128xf32, #tpu.memory_space<vmem>>, vector<16x128xf32>
    tpu.vector_store %arg6[%c0_6, %c0_7], %7 {strides = array<i32>} : memref<16x128xf32, #tpu.memory_space<vmem>>, vector<16x128xf32>,
    return
  }
  func.func @transform_0(%arg0: i32, %arg1: i32, %arg2: i32) -> (i32, i32) {
    %c0_i32 = arith.constant 0 : i32
    return %arg0, %arg2 : i32, i32
  }
  func.func @transform_1(%arg0: i32, %arg1: i32, %arg2: i32) -> (i32, i32) {
    %c0_i32 = arith.constant 0 : i32
    return %arg2, %arg1 : i32, i32
  }
  func.func @transform_2(%arg0: i32, %arg1: i32, %arg2: i32) -> (i32, i32) {
    %c0_i32 = arith.constant 0 : i32
    %c0_i32_0 = arith.constant 0 : i32
    return %c0_i32, %arg1 : i32, i32
  }
  func.func @transform_3(%arg0: i32, %arg1: i32, %arg2: i32) -> (i32, i32) {
    %c0_i32 = arith.constant 0 : i32
    return %arg0, %arg1 : i32, i32
  }
}

</mosaic_0001>

<bundles_post_ra>
// kernel: tpu_custom_call.1
= control target key start
LH: loop header
LB: loop body
LE: loop exit
PB: predicated region body
PF: predicated region fallthrough
CT: control target
= control target key end

     0   :  { %8 = vsyncpa [#allocation3], 0  ;;  %s391_s0 = inlined_call_operand.hbm [shape: bf16[16,128], index: 0, kind: input, shape index: {}]   ;;  %s392_s1 = inlined_call_operand.hbm [shape: bf16[128,128], index: 1, kind: input, shape index: {}]   ;;  %s393_s2 = inlined_call_operand.vmem [shape: f32[1,128], index: 2, kind: input, shape index: {}]   ;;  %s394_s3 = inlined_call_operand.hbm [shape: f32[16,128], index: 3, kind: output, shape index: {}]  }
   0x1   :  { %9 = vsyncpa [#allocation6], 0 }
   0x2   :  { %10 = vsyncpa [#allocation4], 0  ;;  %s323_s12 = smov [#allocation2]   ;;  %s251_s16 = scalar_lea.hbm %s391_s0, 128 }
   0x3   :  { %s16_s13 = sshll.u32 %s323_s12, 4  ;;  %p252_p0 = scmp.ne.s32.totalorder %s391_s0, %s251_s16  ;;  %s17_s13 = int_to_ptr.vmem [resolvable:$true] %s16_s13 }
   0x4   :  { %p255_p1 = scmp.lt.u32.totalorder %s251_s16, %s391_s0 }
   0x6   :  { %p257_p2 = pnand %p255_p1, %p252_p0 }
   0x8   :  { %260 = shalt.err (!%p257_p2)
}
   0x9   :  { %s261_s21 = scalar_lea.vmem %s17_s13, 128  ;;  %p266_p4 = scmp.lt.s32.totalorder %s17_s13, %s17_s13 }
   0xa   :  { %p262_p3 = scmp.ne.s32.totalorder %s17_s13, %s261_s21  ;;  %p267_p5 = scmp.lt.s32.totalorder %s261_s21, %s261_s21 }
   0xc   :  { %p268_p6 = por %p267_p5, %p266_p4 }
   0xe   :  { %p269_p7 = pnand %p268_p6, %p262_p3 }
  0x10   :  { %272 = shalt.err (!%p269_p7)
}
  0x11   :  { %s324_s22 = smov 64   ;;  %s325_s23 = smov 4  }
  0x12   :  { %22 = dma.hbm_to_vmem [thread:$0]  %s391_s0, 128, %s17_s13, [#allocation3], %s324_s22, %s324_s22, %s325_s23  }
  0x13   :  { %s326_s26 = smov [#allocation5]   ;;  %s273_s30 = scalar_lea.hbm %s392_s1, 1024 }
  0x14   :  { %s28_s27 = sshll.u32 %s326_s26, 4  ;;  %p274_p8 = scmp.ne.s32.totalorder %s392_s1, %s273_s30  ;;  %s29_s27 = int_to_ptr.vmem [resolvable:$true] %s28_s27 }
  0x15   :  { %p277_p9 = scmp.lt.u32.totalorder %s273_s30, %s392_s1 }
  0x17   :  { %p279_p10 = pnand %p277_p9, %p274_p8 }
  0x19   :  { %282 = shalt.err (!%p279_p10)
}
  0x1a   :  { %s283_s8 = scalar_lea.vmem %s29_s27, 1024  ;;  %p288_p12 = scmp.lt.s32.totalorder %s29_s27, %s29_s27 }
  0x1b   :  { %p284_p11 = scmp.ne.s32.totalorder %s29_s27, %s283_s8  ;;  %p289_p13 = scmp.lt.s32.totalorder %s283_s8, %s283_s8 }
  0x1d   :  { %p290_p0 = por %p289_p13, %p288_p12 }
  0x1f   :  { %p291_p1 = pnand %p290_p0, %p284_p11 }
  0x21   :  { %294 = shalt.err (!%p291_p1)
}
  0x22   :  { %34 = dma.hbm_to_vmem [thread:$0]  %s392_s1, 1024, %s29_s27, [#allocation6], %s324_s22, %s324_s22, %s325_s23  }
  0x23   :  { %317 = dma.done.wait [#allocation3], 128  }
  0x24   :  { %318 = vsyncadd [#allocation3], 4294967168 }
  0x25   :  { %319 = dma.done.wait [#allocation6], 1024  }
  0x26   :  { %320 = vsyncadd [#allocation6], 4294966272  ;;  %v327_v0 = vmov 0.0   ;;  %vm328_vm0 = vmmov 0   ;;  %v242_v1 = vld [vmem:[#allocation5] sm:$0xff]   ;;  %v243_v2 = vld [vmem:[#allocation5 + $0x8] sm:$0xff]  }
  0x27   :  { %213 = vmatprep.subr.bf16.mxu0 %v327_v0  ;;  %229 = vmatprep.mubr.msk.bf16.mxu0 %vm328_vm0, %v327_v0  ;;  %v244_v3 = vld [vmem:[#allocation5 + $0x10] sm:$0xff]   ;;  %v245_v4 = vld [vmem:[#allocation5 + $0x18] sm:$0xff]   ;;  %v246_v5 = vld [vmem:[#allocation5 + $0x20] sm:$0xff]   ;;  %s329_s11 = smov [#allocation7]  }
  0x28   :  { %214 = vmatpush3.bf16.msra.mxu0 %v242_v1  ;;  %v247_v6 = vld [vmem:[#allocation5 + $0x28] sm:$0xff]   ;;  %v248_v7 = vld [vmem:[#allocation5 + $0x30] sm:$0xff]   ;;  %v249_v8 = vld [vmem:[#allocation5 + $0x38] sm:$0xff]   ;;  %s181_s12 = sshll.u32 %s329_s11, 4  ;;  %s182_s12 = int_to_ptr.vmem [resolvable:$true] %s181_s12 }
  0x29   :  { %215 = vmatprep.subr.bf16.mxu0 %v327_v0  ;;  %v250_v9 = vld [vmem:[#allocation2] sm:$0xff]   ;;  %s295_s13 = scalar_lea.vmem %s182_s12, 256  ;;  %p300_p3 = scmp.lt.s32.totalorder %s182_s12, %s182_s12 }
  0x2a   :  { %v194_v10 = vld [vmem:[%s393_s2] ss:$0 sm:$0xff]  ;;  %p296_p2 = scmp.ne.s32.totalorder %s182_s12, %s295_s13  ;;  %p301_p4 = scmp.lt.s32.totalorder %s295_s13, %s295_s13 }
  0x2c   :  { %216 = vmatpush3.bf16.msra.mxu0 %v243_v2  ;;  %p302_p5 = por %p301_p4, %p300_p3 }
  0x2d   :  { %217 = vmatprep.subr.bf16.mxu0 %v327_v0 }
  0x2e   :  { %p303_p6 = pnand %p302_p5, %p296_p2 }
  0x30   :  { %218 = vmatpush3.bf16.msra.mxu0 %v244_v3 }
  0x31   :  { %219 = vmatprep.subr.bf16.mxu0 %v327_v0 }
  0x34   :  { %220 = vmatpush3.bf16.msra.mxu0 %v245_v4 }
  0x35   :  { %221 = vmatprep.subr.bf16.mxu0 %v327_v0 }
  0x38   :  { %222 = vmatpush3.bf16.msra.mxu0 %v246_v5 }
  0x39   :  { %223 = vmatprep.subr.bf16.mxu0 %v327_v0 }
  0x3c   :  { %224 = vmatpush3.bf16.msra.mxu0 %v247_v6 }
  0x3d   :  { %225 = vmatprep.subr.bf16.mxu0 %v327_v0 }
  0x40   :  { %226 = vmatpush3.bf16.msra.mxu0 %v248_v7 }
  0x41   :  { %227 = vmatprep.subr.bf16.mxu0 %v327_v0 }
  0x44   :  { %228 = vmatpush3.bf16.msra.mxu0 %v249_v8 }
  0x47   :  { %230 = vmatmul.mubr.bf16.vlgmr.msra.gmra.mrb[0].mxu0 %v250_v9 }
 0x11a   :  { %v165_v11 = vpop.f32.mrb[0].mxu0 }
 0x11b   :  { %v172_v12 = vadd.f32 %v194_v10, %v165_v11  ;;  %v231_v13 = vpop.f32.mrb[1].mxu0 }
 0x11c   :  { %v168_v14 = vpop.f32.mrb[2].mxu0 }
 0x11d   :  { %174 = vst [vmem:[#allocation7] sm:$0xff] %v172_v12  ;;  %v173_v15 = vadd.f32 %v194_v10, %v168_v14  ;;  %v232_v16 = vpop.f32.mrb[3].mxu0 }
 0x11f   :  { %175 = vst [vmem:[#allocation7 + $0x8] sm:$0xff] %v173_v15 }
 0x120   :  { %306 = shalt.err (!%p303_p6)
}
 0x121   :  { %s307_s15 = scalar_lea.hbm %s394_s3, 256 }
 0x122   :  { %p308_p7 = scmp.ne.s32.totalorder %s394_s3, %s307_s15  ;;  %p311_p8 = scmp.lt.u32.totalorder %s307_s15, %s394_s3 }
 0x124   :  { %p313_p9 = pnand %p311_p8, %p308_p7 }
 0x126   :  { %316 = shalt.err (!%p313_p9)
}
 0x127   :  { %s330_s20 = smov 128   ;;  %s331_s21 = smov 8  }
 0x128   :  { %187 = dma.vmem_to_hbm [thread:$0]  %s182_s12, 256, %s394_s3, [#allocation4], %s330_s20, %s330_s20, %s331_s21  }
 0x129   :  { %321 = dma.done.wait [#allocation4], 256  }
 0x12a   :  { %322 = vsyncadd [#allocation4], 4294967040 }
 0x12b   :  { %191 = vsyncpa [#allocation3], 1 }
 0x12c   :  { %192 = vsyncpa [#allocation6], 1 }
 0x12d   :  { %193 = vsyncpa [#allocation4], 1 }

</bundles_post_ra>
